<compile_context>
chip_gen: v5e
topology: v5e:2x2
jax: 0.10.0
libtpu: 0.0.40
codegen_flags: <defaults>
</compile_context>

<pallas_src>
import functools

import jax
import jax.numpy as jnp
from jax.experimental import pallas as pl
from jax.experimental.pallas import tpu as pltpu

_LANES = 128


def _swish_kernel(x_ref, o_ref, *, compute_dtype):
    x = x_ref[...].astype(compute_dtype)
    # sigmoid(x) = 1 / (1 + exp(-x)).  exp runs on the EUP in compute_dtype
    # (bf16-native on v6e/v7x); the reciprocal is an approximate f32 vrcp,
    # roughly halving EUP work per element vs. an exact divide.
    denom = (1.0 + jnp.exp(-x)).astype(jnp.float32)
    sig = pl.reciprocal(denom, approx=True).astype(compute_dtype)
    o_ref[...] = (x * sig).astype(o_ref.dtype)


def _compute_dtype_for(dtype):
    """bf16 math on chips with bf16 VPU/EUP (v6e/v7x); f32 everywhere else."""
    if dtype == jnp.bfloat16:
        kind = jax.devices()[0].device_kind.lower()
        if "v5" not in kind:  # v5e has no bf16 VPU/EUP -> keep the f32 upcast
            return jnp.bfloat16
    return jnp.float32


def swish(x: jax.Array, *, tile_rows: int = 8192,
          donate_input: bool = False) -> jax.Array:
    """Elementwise swish (x * sigmoid(x)) via a Pallas TPU kernel."""
    orig_shape = x.shape
    dtype = x.dtype
    n = x.size
    if n == 0:
        return x

    # Fast path: typical conv activations have numel % 128 == 0, so the 2D
    # lane-dense view is a free metadata change (no pad, no extra HBM pass).
    pad = (-n) % _LANES
    if pad:
        x2d = jnp.pad(x.reshape(-1), (0, pad)).reshape(-1, _LANES)
    else:
        x2d = x.reshape(-1, _LANES)
    rows = x2d.shape[0]

    # Block sizing: multiple of 8 sublanes, capped at the array itself.  The
    # ragged last block (rows % block_rows != 0) is masked by Pallas, so rows
    # are never padded up to the tile size.
    tile_rows = max(8, (tile_rows // 8) * 8)
    block_rows = rows if rows <= tile_rows else tile_rows
    grid = (pl.cdiv(rows, block_rows),)

    # VMEM budget: input + output, each double-buffered, plus slack.  Capped
    # well under v7x's 64 MiB physical VMEM; the max() keeps small blocks
    # comfortably within v5e's default scoped limit.
    block_bytes = block_rows * _LANES * dtype.itemsize
    vmem_limit = int(min(56 << 20, max(16 << 20, 4 * block_bytes + (4 << 20))))

    kernel = functools.partial(
        _swish_kernel, compute_dtype=_compute_dtype_for(dtype))

    out2d = pl.pallas_call(
        kernel,
        out_shape=jax.ShapeDtypeStruct((rows, _LANES), dtype),
        grid_spec=pltpu.PrefetchScalarGridSpec(
            num_scalar_prefetch=0,
            grid=grid,
            in_specs=[pl.BlockSpec((block_rows, _LANES), lambda i: (i, 0))],
            out_specs=pl.BlockSpec((block_rows, _LANES), lambda i: (i, 0)),
        ),
        compiler_params=pltpu.CompilerParams(
            # "parallel" lets v7x shard the row-blocks across both TensorCores.
            dimension_semantics=("parallel",),
            vmem_limit_bytes=vmem_limit,
        ),
        # Mirrors the PyTorch inplace=True variant: donate the 2D input view's
        # HBM buffer to the output.  XLA inserts a defensive copy if the input
        # is still live, so enabling it is always safe; off by default so
        # callers (like the test below) can keep using x afterwards.
        input_output_aliases={0: 0} if donate_input else {},
    )(x2d)

    if pad:
        return out2d.reshape(-1)[:n].reshape(orig_shape)
    return out2d.reshape(orig_shape)


if __name__ == "__main__":
    key = jax.random.PRNGKey(0)
    # NCHW input consistent with the MixNetSeg conv stack this activation sits in.
    x = jax.random.normal(key, (2, 4, 16, 16), dtype=jnp.float32)

    y = swish(x)
    jax.block_until_ready(y)

    # Reference: plain JAX swish.  Tolerance is loosened from 1e-6 because the
    # kernel uses the EUP's approximate reciprocal for the sigmoid denominator
    # (pass approx=False in the kernel to recover full f32 precision).
    y_ref = x * jax.nn.sigmoid(x)
    assert y.shape == x.shape and y.dtype == x.dtype
    assert jnp.allclose(y, y_ref, atol=5e-3, rtol=5e-3), (
        float(jnp.max(jnp.abs(y - y_ref))))

    print("KERNEL_OK")
</pallas_src>

<mosaic_0001>
module attributes {stable_mosaic.version = 11 : i64} {
  func.func @_swish_kernel(%arg0: i32, %arg1: memref<16x128xf32, #tpu.memory_space<vmem>>, %arg2: memref<16x128xf32, #tpu.memory_space<vmem>>) attributes {dimension_semantics = [#tpu.dimension_semantics<parallel>], iteration_bounds = array<i64: 1>, scalar_prefetch = 0 : i64, scratch_operands = 0 : i64, tpu.core_type = #tpu.core_type<tc>, window_params = [{transform_indices = @transform_0, window_bounds = array<i64: 16, 128>}, {transform_indices = @transform_1, window_bounds = array<i64: 16, 128>}]} {
    %c0 = arith.constant 0 : index
    %c0_0 = arith.constant 0 : index
    %0 = vector.load %arg1[%c0, %c0_0] : memref<16x128xf32, #tpu.memory_space<vmem>>, vector<16x128xf32>
    %cst = arith.constant 0.000000e+00 : f32
    %1 = vector.broadcast %cst : f32 to vector<16x128xf32>
    %2 = arith.subf %1, %0 : vector<16x128xf32>
    %3 = math.exp %2 : vector<16x128xf32>
    %cst_1 = arith.constant 1.000000e+00 : f32
    %4 = vector.broadcast %cst_1 : f32 to vector<16x128xf32>
    %5 = arith.addf %4, %3 : vector<16x128xf32>
    %6 = tpu.reciprocal %5 {approx = true} : vector<16x128xf32> -> vector<16x128xf32>
    %7 = arith.mulf %0, %6 : vector<16x128xf32>
    %c0_2 = arith.constant 0 : index
    %c0_3 = arith.constant 0 : index
    %8 = vector.load %arg2[%c0_2, %c0_3] : memref<16x128xf32, #tpu.memory_space<vmem>>, vector<16x128xf32>
    tpu.vector_store %arg2[%c0_2, %c0_3], %7 {strides = array<i32>} : memref<16x128xf32, #tpu.memory_space<vmem>>, vector<16x128xf32>,
    return
  }
  func.func @transform_0(%arg0: i32) -> (i32, i32) {
    %c0_i32 = arith.constant 0 : i32
    %c0_i32_0 = arith.constant 0 : i32
    return %arg0, %c0_i32 : i32, i32
  }
  func.func @transform_1(%arg0: i32) -> (i32, i32) {
    %c0_i32 = arith.constant 0 : i32
    %c0_i32_0 = arith.constant 0 : i32
    return %arg0, %c0_i32 : i32, i32
  }
}

</mosaic_0001>

<bundles_post_ra>
// kernel: tpu_custom_call.1
= control target key start
LH: loop header
LB: loop body
LE: loop exit
PB: predicated region body
PF: predicated region fallthrough
CT: control target
= control target key end

     0   :  { %6 = vsyncpa [#allocation3], 0  ;;  %s150_s0 = inlined_call_operand.hbm [shape: f32[16,128], index: 0, kind: input, shape index: {}]   ;;  %s151_s1 = inlined_call_operand.hbm [shape: f32[16,128], index: 1, kind: output, shape index: {}]  }
   0x1   :  { %7 = vsyncpa [#allocation4], 0  ;;  %s12_s8 = sshll.u32 %s150_s0, 4  ;;  %s124_s9 = smov [#allocation2]   ;;  %s13_s8 = int_to_ptr.hbm [resolvable:$true] %s12_s8 }
   0x2   :  { %s14_s10 = sshll.u32 %s124_s9, 4  ;;  %s125_s11 = smov 128   ;;  %s15_s10 = int_to_ptr.vmem [resolvable:$true] %s14_s10 }
   0x3   :  { %s126_s12 = smov 8  }
   0x4   :  { %20 = dma.hbm_to_vmem [thread:$0]  %s13_s8, 256, %s15_s10, [#allocation3], %s125_s11, %s125_s11, %s126_s12  }
   0x5   :  { %120 = dma.done.wait [#allocation3], 256  }
   0x6   :  { %121 = vsyncadd [#allocation3], 4294967040  ;;  %v25_v0 = vld [vmem:[#allocation2] sm:$0xff]  ;;  %v26_v1 = vld [vmem:[#allocation2 + $0x8] sm:$0xff]  ;;  %s127_s0 = smov [#allocation5]   ;;  %s47_s16 = sshll.u32 %s151_s1, 4  ;;  %s48_s16 = int_to_ptr.hbm [resolvable:$true] %s47_s16 }
   0x7   :  { %v27_v2 = vsub.f32 0.0, %v25_v0  ;;  %v28_v3 = vsub.f32 0.0, %v26_v1  ;;  %s45_s13 = sshll.u32 %s127_s0, 4  ;;  %s46_s13 = int_to_ptr.vmem [resolvable:$true] %s45_s13 }
   0x9   :  { %v29_v4 = vmul.f32 1.442695, %v27_v2  ;;  %v31_v5 = vmul.f32 1.442695, %v28_v3 }
   0xb   :  { %64 = vpow2.f32 %v29_v4 }
   0xc   :  { %66 = vpow2.f32 %v31_v5 }
  0x11   :  { %v65_v6 = vpop.eup %64 }
  0x12   :  { %v67_v7 = vpop.eup %66  ;;  %v33_v8 = vadd.f32 1.0, %v65_v6 }
  0x13   :  { %v34_v9 = vadd.f32 1.0, %v67_v7 }
  0x14   :  { %68 = vrcp.f32 %v33_v8 }
  0x15   :  { %70 = vrcp.f32 %v34_v9 }
  0x1a   :  { %v69_v10 = vpop.eup %68 }
  0x1b   :  { %v71_v11 = vpop.eup %70  ;;  %v37_v12 = vmul.f32 %v69_v10, %v25_v0 }
  0x1c   :  { %v38_v13 = vmul.f32 %v71_v11, %v26_v1 }
  0x1d   :  { %39 = vst [vmem:[#allocation5] sm:$0xff] %v37_v12 }
  0x1e   :  { %40 = vst [vmem:[#allocation5 + $0x8] sm:$0xff] %v38_v13 }
  0x1f   :  { %53 = dma.vmem_to_hbm [thread:$0]  %s46_s13, 256, %s48_s16, [#allocation4], %s125_s11, %s125_s11, %s126_s12  }
  0x20   :  { %122 = dma.done.wait [#allocation4], 256  }
  0x21   :  { %123 = vsyncadd [#allocation4], 4294967040 }
  0x22   :  { %58 = vsyncpa [#allocation3], 1 }
  0x23   :  { %59 = vsyncpa [#allocation4], 1 }

</bundles_post_ra>
